<compile_context>
chip_gen: v6e
topology: v6e:2x2x1
jax: 0.10.0
libtpu: 0.0.40
codegen_flags: <defaults>
</compile_context>

<pallas_src>
import functools

import jax
import jax.numpy as jnp
from jax.experimental import pallas as pl
from jax.experimental.pallas import tpu as pltpu


# -------------------------- Pallas kernel --------------------------
def _toy_gin_kernel(a_ref, x_ref, m_ref,
                    w1_ref, b1_ref, w2_ref, b2_ref, w3_ref, b3_ref,
                    wlt_ref, bl_ref,
                    out_ref):
    """One grid step processes G graphs.

    a_ref : (G, N, N)      x_ref : (G, N, Fp)   m_ref : (G, N, H)
    w1    : (Fp, H)        w2/w3 : (H, H)       b1/b2/b3 : (1, H)
    wlt   : (1, H)  (transposed final weight)   bl : (1, 1)
    out   : (G, 1)  (per-block output tile)
    """
    G, N, Fp = x_ref.shape
    H = w1_ref.shape[1]

    A = a_ref[...]                                  # (G, N, N)
    mask_flat = m_ref[...].reshape(G * N, H)        # (G*N, H)

    def gin_relu_mask(h_flat, w_ref, b_ref):
        # shared-weight transform as ONE big matmul: (G*N, K) @ (K, H)  (MXU)
        z = jnp.dot(h_flat, w_ref[...], preferred_element_type=jnp.float32)
        # per-graph neighbor-sum aggregation: A @ (h W)  (batched MXU)
        agg = jnp.einsum("gij,gjf->gif", A, z.reshape(G, N, H),
                         preferred_element_type=jnp.float32).reshape(G * N, H)
        # bias + relu + mask (VPU)
        return jnp.maximum(agg + b_ref[...], 0.0) * mask_flat

    h = x_ref[...].reshape(G * N, Fp)               # (G*N, Fp)
    h = gin_relu_mask(h, w1_ref, b1_ref)            # (G*N, H)
    h = gin_relu_mask(h, w2_ref, b2_ref)
    h = gin_relu_mask(h, w3_ref, b3_ref)

    # GlobalSumPooling over the node axis -> (G, H)
    pooled = jnp.sum(h.reshape(G, N, H), axis=1)

    # final Linear(H -> 1) on the VPU, batched over the G graphs
    y = jnp.sum(pooled * wlt_ref[...], axis=-1, keepdims=True) + bl_ref[...]   # (G, 1)
    out_ref[...] = y.astype(out_ref.dtype)


# -------------------------- wrapper --------------------------
@jax.jit
def toy_gin_forward(A, x, masks, params):
    B, N, F_in = x.shape
    H = masks.shape[-1]                      # 64
    (w1, b1, w2, b2, w3, b3, wl, bl) = params

    # --- pad the input feature dim to a multiple of 128 (clean lane layout / MXU K) ---
    Fp = pl.cdiv(F_in, 128) * 128
    if Fp != F_in:
        x = jnp.pad(x, ((0, 0), (0, 0), (0, Fp - F_in)))
        w1 = jnp.pad(w1, ((0, Fp - F_in), (0, 0)))   # zero rows -> identical result

    # final-linear weight as a (1, H) row vector for the VPU reduction
    wl_t = wl.T                                       # (1, H)
    if bl.ndim == 1:
        bl = bl.reshape(1, 1)

    # --- graphs per grid step: aim for ~128 rows in the flat matmul, whole batch if small ---
    G = max(1, min(B, pl.cdiv(128, N)))               # toy case (B=2, N=8) -> G=2, grid=(1,)
    Bp = pl.cdiv(B, G) * G
    if Bp != B:
        pad = Bp - B
        A = jnp.pad(A, ((0, pad), (0, 0), (0, 0)))
        x = jnp.pad(x, ((0, pad), (0, 0), (0, 0)))
        masks = jnp.pad(masks, ((0, pad), (0, 0), (0, 0)))
    num_blocks = Bp // G

    full = lambda arr: pl.BlockSpec(arr.shape, lambda g: (0,) * arr.ndim)

    grid_spec = pltpu.PrefetchScalarGridSpec(
        num_scalar_prefetch=0,
        grid=(num_blocks,),
        in_specs=[
            pl.BlockSpec((G, N, N), lambda g: (g, 0, 0)),    # A    (per-block tile)
            pl.BlockSpec((G, N, Fp), lambda g: (g, 0, 0)),   # x    (padded)
            pl.BlockSpec((G, N, H), lambda g: (g, 0, 0)),    # masks
            full(w1), full(b1),
            full(w2), full(b2),
            full(w3), full(b3),
            full(wl_t), full(bl),
        ],
        # per-block output (no revisiting) so the batch axis can be sharded across
        # TensorCores on v7x; lane-dense output only matters at large B (negligible here).
        out_specs=pl.BlockSpec((G, 1), lambda g: (g, 0)),
    )

    out = pl.pallas_call(
        _toy_gin_kernel,
        out_shape=jax.ShapeDtypeStruct((Bp, 1), jnp.float32),
        grid_spec=grid_spec,
        compiler_params=pltpu.CompilerParams(
            dimension_semantics=("parallel",),
        ),
    )(A, x, masks, w1, b1, w2, b2, w3, b3, wl_t, bl)

    return out[:B]


# -------------------------- pure-JAX reference --------------------------
def toy_gin_reference(A, x, masks, params):
    (w1, b1, w2, b2, w3, b3, wl, bl) = params

    def gin(A, h, w, b):
        agg = jnp.einsum("bij,bjf->bif", A, h)
        return jnp.einsum("bnf,fo->bno", agg, w) + b

    h = jnp.maximum(gin(A, x, w1, b1), 0.0) * masks[:, :, :64]
    h = jnp.maximum(gin(A, h, w2, b2), 0.0) * masks[:, :, :64]
    h = jnp.maximum(gin(A, h, w3, b3), 0.0) * masks[:, :, :64]
    pooled = jnp.sum(h, axis=1)                      # GlobalSumPooling -> (B, 64)
    return pooled @ wl + bl                          # Linear(64, 1) -> (B, 1)


# -------------------------- parameter init --------------------------
def init_params(key):
    """Deterministic init mimicking torch.nn.Linear: U(-1/sqrt(fan_in), 1/sqrt(fan_in))."""
    def linear(key, fan_in, fan_out):
        kw, kb = jax.random.split(key)
        bound = 1.0 / jnp.sqrt(fan_in)
        w = jax.random.uniform(kw, (fan_in, fan_out), jnp.float32, -bound, bound)
        b = jax.random.uniform(kb, (1, fan_out), jnp.float32, -bound, bound)
        return w, b

    k1, k2, k3, k4 = jax.random.split(key, 4)
    w1, b1 = linear(k1, 121, 64)   # gin1
    w2, b2 = linear(k2, 64, 64)    # gin2
    w3, b3 = linear(k3, 64, 64)    # gin3
    wl, bl = linear(k4, 64, 1)     # final linear
    return (w1, b1, w2, b2, w3, b3, wl, bl)


# -------------------------- main --------------------------
if __name__ == "__main__":
    B, N, F_IN = 2, 8, 121

    key = jax.random.PRNGKey(0)
    k_a, k_x, k_m, k_p = jax.random.split(key, 4)

    # symmetric 0/1 adjacency (synthetic)
    A_rand = (jax.random.uniform(k_a, (B, N, N)) > 0.5).astype(jnp.float32)
    A = jnp.maximum(A_rand, jnp.swapaxes(A_rand, 1, 2))                      # (B, N, N)
    x = jax.random.normal(k_x, (B, N, F_IN), dtype=jnp.float32)              # (B, N, 121)
    masks = (jax.random.uniform(k_m, (B, N, 64)) > 0.2).astype(jnp.float32)  # (B, N, 64)

    params = init_params(k_p)

    out = toy_gin_forward(A, x, masks, params)
    out = jax.block_until_ready(out)

    ref = toy_gin_reference(A, x, masks, params)
    assert out.shape == (B, 1)
    assert jnp.allclose(out, ref, atol=1e-3, rtol=1e-3), (out, ref)

    print("KERNEL_OK")
</pallas_src>

<mosaic_0001>
module attributes {stable_mosaic.version = 11 : i64} {
  func.func @_toy_gin_kernel(%arg0: i32, %arg1: memref<2x8x8xf32, #tpu.memory_space<vmem>>, %arg2: memref<2x8x128xf32, #tpu.memory_space<vmem>>, %arg3: memref<2x8x64xf32, #tpu.memory_space<vmem>>, %arg4: memref<128x64xf32, #tpu.memory_space<vmem>>, %arg5: memref<1x64xf32, #tpu.memory_space<vmem>>, %arg6: memref<64x64xf32, #tpu.memory_space<vmem>>, %arg7: memref<1x64xf32, #tpu.memory_space<vmem>>, %arg8: memref<64x64xf32, #tpu.memory_space<vmem>>, %arg9: memref<1x64xf32, #tpu.memory_space<vmem>>, %arg10: memref<1x64xf32, #tpu.memory_space<vmem>>, %arg11: memref<1x1xf32, #tpu.memory_space<vmem>>, %arg12: memref<2x1xf32, #tpu.memory_space<vmem>>) attributes {dimension_semantics = [#tpu.dimension_semantics<parallel>], iteration_bounds = array<i64: 1>, scalar_prefetch = 0 : i64, scratch_operands = 0 : i64, tpu.core_type = #tpu.core_type<tc>, window_params = [{transform_indices = @transform_0, window_bounds = array<i64: 2, 8, 8>}, {transform_indices = @transform_1, window_bounds = array<i64: 2, 8, 128>}, {transform_indices = @transform_2, window_bounds = array<i64: 2, 8, 64>}, {pipeline_mode = #tpu.pipeline_mode<synchronous>, transform_indices = @transform_3, window_bounds = array<i64: 128, 64>}, {pipeline_mode = #tpu.pipeline_mode<synchronous>, transform_indices = @transform_4, window_bounds = array<i64: 1, 64>}, {pipeline_mode = #tpu.pipeline_mode<synchronous>, transform_indices = @transform_5, window_bounds = array<i64: 64, 64>}, {pipeline_mode = #tpu.pipeline_mode<synchronous>, transform_indices = @transform_6, window_bounds = array<i64: 1, 64>}, {pipeline_mode = #tpu.pipeline_mode<synchronous>, transform_indices = @transform_7, window_bounds = array<i64: 64, 64>}, {pipeline_mode = #tpu.pipeline_mode<synchronous>, transform_indices = @transform_8, window_bounds = array<i64: 1, 64>}, {pipeline_mode = #tpu.pipeline_mode<synchronous>, transform_indices = @transform_9, window_bounds = array<i64: 1, 64>}, {pipeline_mode = #tpu.pipeline_mode<synchronous>, transform_indices = @transform_10, window_bounds = array<i64: 1, 1>}, {transform_indices = @transform_11, window_bounds = array<i64: 2, 1>}]} {
    %c0 = arith.constant 0 : index
    %c0_0 = arith.constant 0 : index
    %c0_1 = arith.constant 0 : index
    %0 = vector.load %arg1[%c0, %c0_0, %c0_1] : memref<2x8x8xf32, #tpu.memory_space<vmem>>, vector<2x8x8xf32>
    %c0_2 = arith.constant 0 : index
    %c0_3 = arith.constant 0 : index
    %c0_4 = arith.constant 0 : index
    %1 = vector.load %arg3[%c0_2, %c0_3, %c0_4] : memref<2x8x64xf32, #tpu.memory_space<vmem>>, vector<2x8x64xf32>
    %2 = vector.shape_cast %1 : vector<2x8x64xf32> to vector<16x64xf32>
    %c0_5 = arith.constant 0 : index
    %c0_6 = arith.constant 0 : index
    %c0_7 = arith.constant 0 : index
    %3 = vector.load %arg2[%c0_5, %c0_6, %c0_7] : memref<2x8x128xf32, #tpu.memory_space<vmem>>, vector<2x8x128xf32>
    %4 = vector.shape_cast %3 : vector<2x8x128xf32> to vector<16x128xf32>
    %c0_8 = arith.constant 0 : index
    %c0_9 = arith.constant 0 : index
    %5 = vector.load %arg4[%c0_8, %c0_9] : memref<128x64xf32, #tpu.memory_space<vmem>>, vector<128x64xf32>
    %cst = arith.constant dense<0.000000e+00> : vector<16x64xf32>
    %6 = tpu.matmul %4, %5, %cst {dimension_numbers = #tpu.dot_dimension_numbers<[1], [0], [0], [1], [0, 0, 1, 1], [], []>} : vector<16x128xf32>, vector<128x64xf32>, vector<16x64xf32> -> vector<16x64xf32>
    %7 = vector.shape_cast %6 : vector<16x64xf32> to vector<2x8x64xf32>
    "tpu.trace_start"() <{level = 10 : i32, message = "gij,gjf->gif"}> : () -> ()
    %cst_10 = arith.constant dense<0.000000e+00> : vector<2x8x64xf32>
    %8 = tpu.matmul %0, %7, %cst_10 {dimension_numbers = #tpu.dot_dimension_numbers<[2], [1], [1], [2], [0, 0, 0, 1, 1, 2], [0], [0]>} : vector<2x8x8xf32>, vector<2x8x64xf32>, vector<2x8x64xf32> -> vector<2x8x64xf32>
    "tpu.trace_stop"() : () -> ()
    %9 = vector.shape_cast %8 : vector<2x8x64xf32> to vector<16x64xf32>
    %c0_11 = arith.constant 0 : index
    %c0_12 = arith.constant 0 : index
    %10 = vector.load %arg5[%c0_11, %c0_12] : memref<1x64xf32, #tpu.memory_space<vmem>>, vector<1x64xf32>
    %11 = vector.broadcast %10 : vector<1x64xf32> to vector<16x64xf32>
    %12 = arith.addf %9, %11 : vector<16x64xf32>
    %cst_13 = arith.constant 0.000000e+00 : f32
    %13 = vector.broadcast %cst_13 : f32 to vector<16x64xf32>
    %14 = arith.maximumf %12, %13 : vector<16x64xf32>
    %15 = arith.mulf %14, %2 : vector<16x64xf32>
    %c0_14 = arith.constant 0 : index
    %c0_15 = arith.constant 0 : index
    %16 = vector.load %arg6[%c0_14, %c0_15] : memref<64x64xf32, #tpu.memory_space<vmem>>, vector<64x64xf32>
    %cst_16 = arith.constant dense<0.000000e+00> : vector<16x64xf32>
    %17 = tpu.matmul %15, %16, %cst_16 {dimension_numbers = #tpu.dot_dimension_numbers<[1], [0], [0], [1], [0, 0, 1, 1], [], []>} : vector<16x64xf32>, vector<64x64xf32>, vector<16x64xf32> -> vector<16x64xf32>
    %18 = vector.shape_cast %17 : vector<16x64xf32> to vector<2x8x64xf32>
    "tpu.trace_start"() <{level = 10 : i32, message = "gij,gjf->gif"}> : () -> ()
    %cst_17 = arith.constant dense<0.000000e+00> : vector<2x8x64xf32>
    %19 = tpu.matmul %0, %18, %cst_17 {dimension_numbers = #tpu.dot_dimension_numbers<[2], [1], [1], [2], [0, 0, 0, 1, 1, 2], [0], [0]>} : vector<2x8x8xf32>, vector<2x8x64xf32>, vector<2x8x64xf32> -> vector<2x8x64xf32>
    "tpu.trace_stop"() : () -> ()
    %20 = vector.shape_cast %19 : vector<2x8x64xf32> to vector<16x64xf32>
    %c0_18 = arith.constant 0 : index
    %c0_19 = arith.constant 0 : index
    %21 = vector.load %arg7[%c0_18, %c0_19] : memref<1x64xf32, #tpu.memory_space<vmem>>, vector<1x64xf32>
    %22 = vector.broadcast %21 : vector<1x64xf32> to vector<16x64xf32>
    %23 = arith.addf %20, %22 : vector<16x64xf32>
    %cst_20 = arith.constant 0.000000e+00 : f32
    %24 = vector.broadcast %cst_20 : f32 to vector<16x64xf32>
    %25 = arith.maximumf %23, %24 : vector<16x64xf32>
    %26 = arith.mulf %25, %2 : vector<16x64xf32>
    %c0_21 = arith.constant 0 : index
    %c0_22 = arith.constant 0 : index
    %27 = vector.load %arg8[%c0_21, %c0_22] : memref<64x64xf32, #tpu.memory_space<vmem>>, vector<64x64xf32>
    %cst_23 = arith.constant dense<0.000000e+00> : vector<16x64xf32>
    %28 = tpu.matmul %26, %27, %cst_23 {dimension_numbers = #tpu.dot_dimension_numbers<[1], [0], [0], [1], [0, 0, 1, 1], [], []>} : vector<16x64xf32>, vector<64x64xf32>, vector<16x64xf32> -> vector<16x64xf32>
    %29 = vector.shape_cast %28 : vector<16x64xf32> to vector<2x8x64xf32>
    "tpu.trace_start"() <{level = 10 : i32, message = "gij,gjf->gif"}> : () -> ()
    %cst_24 = arith.constant dense<0.000000e+00> : vector<2x8x64xf32>
    %30 = tpu.matmul %0, %29, %cst_24 {dimension_numbers = #tpu.dot_dimension_numbers<[2], [1], [1], [2], [0, 0, 0, 1, 1, 2], [0], [0]>} : vector<2x8x8xf32>, vector<2x8x64xf32>, vector<2x8x64xf32> -> vector<2x8x64xf32>
    "tpu.trace_stop"() : () -> ()
    %31 = vector.shape_cast %30 : vector<2x8x64xf32> to vector<16x64xf32>
    %c0_25 = arith.constant 0 : index
    %c0_26 = arith.constant 0 : index
    %32 = vector.load %arg9[%c0_25, %c0_26] : memref<1x64xf32, #tpu.memory_space<vmem>>, vector<1x64xf32>
    %33 = vector.broadcast %32 : vector<1x64xf32> to vector<16x64xf32>
    %34 = arith.addf %31, %33 : vector<16x64xf32>
    %cst_27 = arith.constant 0.000000e+00 : f32
    %35 = vector.broadcast %cst_27 : f32 to vector<16x64xf32>
    %36 = arith.maximumf %34, %35 : vector<16x64xf32>
    %37 = arith.mulf %36, %2 : vector<16x64xf32>
    %38 = vector.shape_cast %37 : vector<16x64xf32> to vector<2x8x64xf32>
    %cst_28 = arith.constant dense<0.000000e+00> : vector<2x64xf32>
    %39 = vector.multi_reduction <add>, %38, %cst_28 [1] : vector<2x8x64xf32> to vector<2x64xf32>
    %c0_29 = arith.constant 0 : index
    %c0_30 = arith.constant 0 : index
    %40 = vector.load %arg10[%c0_29, %c0_30] : memref<1x64xf32, #tpu.memory_space<vmem>>, vector<1x64xf32>
    %41 = vector.broadcast %40 : vector<1x64xf32> to vector<2x64xf32>
    %42 = arith.mulf %39, %41 : vector<2x64xf32>
    %cst_31 = arith.constant dense<0.000000e+00> : vector<2xf32>
    %43 = vector.multi_reduction <add>, %42, %cst_31 [1] : vector<2x64xf32> to vector<2xf32>
    %44 = vector.shape_cast %43 : vector<2xf32> to vector<2x1xf32>
    %c0_32 = arith.constant 0 : index
    %c0_33 = arith.constant 0 : index
    %45 = vector.load %arg11[%c0_32, %c0_33] : memref<1x1xf32, #tpu.memory_space<vmem>>, vector<1x1xf32>
    %46 = vector.broadcast %45 : vector<1x1xf32> to vector<2x1xf32>
    %47 = arith.addf %44, %46 : vector<2x1xf32>
    %c0_34 = arith.constant 0 : index
    %c0_35 = arith.constant 0 : index
    %48 = vector.load %arg12[%c0_34, %c0_35] : memref<2x1xf32, #tpu.memory_space<vmem>>, vector<2x1xf32>
    tpu.vector_store %arg12[%c0_34, %c0_35], %47 {strides = array<i32>} : memref<2x1xf32, #tpu.memory_space<vmem>>, vector<2x1xf32>,
    return
  }
  func.func @transform_0(%arg0: i32) -> (i32, i32, i32) {
    %c0_i32 = arith.constant 0 : i32
    %c0_i32_0 = arith.constant 0 : i32
    %c0_i32_1 = arith.constant 0 : i32
    return %arg0, %c0_i32, %c0_i32_0 : i32, i32, i32
  }
  func.func @transform_1(%arg0: i32) -> (i32, i32, i32) {
    %c0_i32 = arith.constant 0 : i32
    %c0_i32_0 = arith.constant 0 : i32
    %c0_i32_1 = arith.constant 0 : i32
    return %arg0, %c0_i32, %c0_i32_0 : i32, i32, i32
  }
  func.func @transform_2(%arg0: i32) -> (i32, i32, i32) {
    %c0_i32 = arith.constant 0 : i32
    %c0_i32_0 = arith.constant 0 : i32
    %c0_i32_1 = arith.constant 0 : i32
    return %arg0, %c0_i32, %c0_i32_0 : i32, i32, i32
  }
  func.func @transform_3(%arg0: i32) -> (i32, i32) {
    %c0_i32 = arith.constant 0 : i32
    %c0_i32_0 = arith.constant 0 : i32
    %c0_i32_1 = arith.constant 0 : i32
    return %c0_i32, %c0_i32_0 : i32, i32
  }
  func.func @transform_4(%arg0: i32) -> (i32, i32) {
    %c0_i32 = arith.constant 0 : i32
    %c0_i32_0 = arith.constant 0 : i32
    %c0_i32_1 = arith.constant 0 : i32
    return %c0_i32, %c0_i32_0 : i32, i32
  }
  func.func @transform_5(%arg0: i32) -> (i32, i32) {
    %c0_i32 = arith.constant 0 : i32
    %c0_i32_0 = arith.constant 0 : i32
    %c0_i32_1 = arith.constant 0 : i32
    return %c0_i32, %c0_i32_0 : i32, i32
  }
  func.func @transform_6(%arg0: i32) -> (i32, i32) {
    %c0_i32 = arith.constant 0 : i32
    %c0_i32_0 = arith.constant 0 : i32
    %c0_i32_1 = arith.constant 0 : i32
    return %c0_i32, %c0_i32_0 : i32, i32
  }
  func.func @transform_7(%arg0: i32) -> (i32, i32) {
    %c0_i32 = arith.constant 0 : i32
    %c0_i32_0 = arith.constant 0 : i32
    %c0_i32_1 = arith.constant 0 : i32
    return %c0_i32, %c0_i32_0 : i32, i32
  }
  func.func @transform_8(%arg0: i32) -> (i32, i32) {
    %c0_i32 = arith.constant 0 : i32
    %c0_i32_0 = arith.constant 0 : i32
    %c0_i32_1 = arith.constant 0 : i32
    return %c0_i32, %c0_i32_0 : i32, i32
  }
  func.func @transform_9(%arg0: i32) -> (i32, i32) {
    %c0_i32 = arith.constant 0 : i32
    %c0_i32_0 = arith.constant 0 : i32
    %c0_i32_1 = arith.constant 0 : i32
    return %c0_i32, %c0_i32_0 : i32, i32
  }
  func.func @transform_10(%arg0: i32) -> (i32, i32) {
    %c0_i32 = arith.constant 0 : i32
    %c0_i32_0 = arith.constant 0 : i32
    %c0_i32_1 = arith.constant 0 : i32
    return %c0_i32, %c0_i32_0 : i32, i32
  }
  func.func @transform_11(%arg0: i32) -> (i32, i32) {
    %c0_i32 = arith.constant 0 : i32
    %c0_i32_0 = arith.constant 0 : i32
    return %arg0, %c0_i32 : i32, i32
  }
}

</mosaic_0001>

<bundles_post_ra>
// kernel: toy_gin_forward.1
= control target key start
LH: loop header
LB: loop body
LE: loop exit
PB: predicated region body
PF: predicated region fallthrough
CT: control target
= control target key end

     0   :  { %v999_v18 = vmov 0.0   ;;  %vm1000_vm0 = vmmov 0   ;;  %vm137_vm1 = vcmask 64512   ;;  %vm305_vm2 = vcmask 523264   ;;  %s1243_s3 = inlined_call_operand.vmem [shape: f32[128,64], index: 3, kind: input, shape index: {}]   ;;  %s1244_s1 = inlined_call_operand.vmem [shape: f32[2,8,128], index: 1, kind: input, shape index: {}]   ;;  %s1245_s0 = inlined_call_operand.vmem [shape: f32[2,8,8], index: 0, kind: input, shape index: {}]   ;;  %s1246_s5 = inlined_call_operand.vmem [shape: f32[64,64], index: 5, kind: input, shape index: {}]   ;;  %s1247_s4 = inlined_call_operand.vmem [shape: f32[1,64], index: 4, kind: input, shape index: {}]   ;;  %s1248_s2 = inlined_call_operand.vmem [shape: f32[2,8,64], index: 2, kind: input, shape index: {}]   ;;  %s1249_s7 = inlined_call_operand.vmem [shape: f32[64,64], index: 7, kind: input, shape index: {}]   ;;  %s1250_s6 = inlined_call_operand.vmem [shape: f32[1,64], index: 6, kind: input, shape index: {}]   ;;  %s1251_s10 = inlined_call_operand.<no memory space> [shape: f32[1,1], index: 10, kind: input, shape index: {}]   ;;  %s1252_s8 = inlined_call_operand.vmem [shape: f32[1,64], index: 8, kind: input, shape index: {}]   ;;  %s1253_s9 = inlined_call_operand.vmem [shape: f32[1,64], index: 9, kind: input, shape index: {}]   ;;  %s1254_s11 = inlined_call_operand.vmem [shape: f32[2,1], index: 11, kind: output, shape index: {}]  }
   0x1   :  { %v61_v0 = vld [vmem:[%s1243_s3 + $0x78] sm:$0xff]  ;;  %v60_v1 = vld [vmem:[%s1243_s3 + $0x70] sm:$0xff]  ;;  %v59_v2 = vld [vmem:[%s1243_s3 + $0x68] sm:$0xff]  ;;  %934 = vmatprep.subr.mxu1 %v999_v18  ;;  %936 = vmatprep.mubr.msk.f32.mxu1 %vm1000_vm0, %v999_v18  ;;  %vm808_vm3 = vcmask 1041409   ;;  %vm811_vm4 = vcmask 517120   ;;  %vm823_vm5 = vcmask 1024  }
   0x2   :  { %894 = vmatprep.subr.mxu0 %v61_v0  ;;  %v58_v3 = vld [vmem:[%s1243_s3 + $0x60] sm:$0xff]  ;;  %v57_v5 = vld [vmem:[%s1243_s3 + $0x58] sm:$0xff]  ;;  %v56_v6 = vld [vmem:[%s1243_s3 + $0x50] sm:$0xff] }
   0x3   :  { %895 = vmatpush3.msra.mxu0 %v61_v0  ;;  %v44_v4 = vld [vmem:[%s1244_s1] sm:$0xff]  ;;  %v55_v7 = vld [vmem:[%s1243_s3 + $0x48] sm:$0xff]  ;;  %v53_v9 = vld [vmem:[%s1243_s3 + $0x38] sm:$0xff] }
   0x4   :  { %896 = vmatprep.subr.mxu0 %v60_v1  ;;  %926 = vmatprep.mubr.f32.mxu0 %v44_v4  ;;  %v54_v8 = vld [vmem:[%s1243_s3 + $0x40] sm:$0xff]  ;;  %v52_v10 = vld [vmem:[%s1243_s3 + $0x30] sm:$0xff]  ;;  %v51_v11 = vld [vmem:[%s1243_s3 + $0x28] sm:$0xff] }
   0x5   :  { %897 = vmatpush3.msra.mxu0 %v60_v1  ;;  %v50_v12 = vld [vmem:[%s1243_s3 + $0x20] sm:$0xff]  ;;  %v49_v13 = vld [vmem:[%s1243_s3 + $0x18] sm:$0xff]  ;;  %v48_v14 = vld [vmem:[%s1243_s3 + $0x10] sm:$0xff] }
   0x6   :  { %898 = vmatprep.subr.mxu0 %v59_v2  ;;  %v47_v15 = vld [vmem:[%s1243_s3 + $0x8] sm:$0xff]  ;;  %v46_v16 = vld [vmem:[%s1243_s3] sm:$0xff]  ;;  %v304_v20 = vld [vmem:[%s1246_s5 + $0x38] sm:$0xff] }
   0x7   :  { %899 = vmatpush3.msra.mxu0 %v59_v2  ;;  %v45_v17 = vld [vmem:[%s1244_s1 + $0x8] sm:$0xff]  ;;  %v1132_v22 = vld [vmem:[%s1245_s0] sm:$0xff]  ;;  %v303_v23 = vld [vmem:[%s1246_s5 + $0x30] sm:$0xff] }
   0x8   :  { %900 = vmatprep.subr.mxu0 %v58_v3  ;;  %v1124_v19 = vld [vmem:[%s1245_s0 + $0x8] sm:$0xff]  ;;  %v301_v26 = vld [vmem:[%s1246_s5 + $0x20] sm:$0xff]  ;;  %v300_v27 = vld [vmem:[%s1246_s5 + $0x18] sm:$0xff] }
   0x9   :  { %901 = vmatpush3.msra.mxu0 %v58_v3  ;;  %v302_v25 = vld [vmem:[%s1246_s5 + $0x28] sm:$0xff]  ;;  %v299_v28 = vld [vmem:[%s1246_s5 + $0x10] sm:$0xff]  ;;  %v297_v30 = vld [vmem:[%s1246_s5] sm:$0xff]  ;;  %v16_v3 = vstv %s1251_s10 }
   0xa   :  { %902 = vmatprep.subr.mxu0 %v57_v5  ;;  %v298_v29 = vld [vmem:[%s1246_s5 + $0x8] sm:$0xff]  ;;  %v831_v31 = vld [vmem:[%s1247_s4] ss:$0 sm:$0xff]  ;;  %v547_v46 = vld [vmem:[%s1249_s7 + $0x38] sm:$0xff]  ;;  %17 = vst [vmem:[#allocation2] sm:$0x1] %v16_v3 }
   0xb   :  { %903 = vmatpush3.msra.mxu0 %v57_v5  ;;  %v1169_v36 = vld [vmem:[%s1248_s2 + $0x8] sm:$0xff]  ;;  %v1174_v39 = vld [vmem:[%s1248_s2] sm:$0xff]  ;;  %v546_v47 = vld [vmem:[%s1249_s7 + $0x30] sm:$0xff] }
   0xc   :  { %904 = vmatprep.subr.mxu0 %v56_v6  ;;  %v545_v48 = vld [vmem:[%s1249_s7 + $0x28] sm:$0xff]  ;;  %v544_v49 = vld [vmem:[%s1249_s7 + $0x20] sm:$0xff]  ;;  %v543_v50 = vld [vmem:[%s1249_s7 + $0x18] sm:$0xff] }
   0xd   :  { %905 = vmatpush3.msra.mxu0 %v56_v6  ;;  %v542_v51 = vld [vmem:[%s1249_s7 + $0x10] sm:$0xff]  ;;  %v541_v52 = vld [vmem:[%s1249_s7 + $0x8] sm:$0xff]  ;;  %v540_v53 = vld [vmem:[%s1249_s7] sm:$0xff] }
   0xe   :  { %906 = vmatprep.subr.mxu0 %v55_v7  ;;  %v836_v54 = vld [vmem:[%s1250_s6] ss:$0 sm:$0xff] }
   0xf   :  { %907 = vmatpush3.msra.mxu0 %v55_v7  ;;  %v841_v4 = vld [vmem:[%s1252_s8] ss:$0 sm:$0xff] }
  0x10   :  { %908 = vmatprep.subr.mxu0 %v54_v8 }
  0x11   :  { %909 = vmatpush3.msra.mxu0 %v54_v8 }
  0x12   :  { %910 = vmatprep.subr.mxu0 %v53_v9 }
  0x13   :  { %911 = vmatpush3.msra.mxu0 %v53_v9 }
  0x14   :  { %912 = vmatprep.subr.mxu0 %v52_v10 }
  0x15   :  { %913 = vmatpush3.msra.mxu0 %v52_v10 }
  0x16   :  { %914 = vmatprep.subr.mxu0 %v51_v11 }
  0x17   :  { %915 = vmatpush3.msra.mxu0 %v51_v11 }
  0x18   :  { %916 = vmatprep.subr.mxu0 %v50_v12 }
  0x19   :  { %917 = vmatpush3.msra.mxu0 %v50_v12 }
  0x1a   :  { %918 = vmatprep.subr.mxu0 %v49_v13 }
  0x1b   :  { %919 = vmatpush3.msra.mxu0 %v49_v13 }
  0x1c   :  { %920 = vmatprep.subr.mxu0 %v48_v14 }
  0x1d   :  { %921 = vmatpush3.msra.mxu0 %v48_v14 }
  0x1e   :  { %922 = vmatprep.subr.mxu0 %v47_v15 }
  0x1f   :  { %923 = vmatpush3.msra.mxu0 %v47_v15 }
  0x20   :  { %924 = vmatprep.subr.mxu0 %v46_v16 }
  0x21   :  { %925 = vmatpush3.msra.mxu0 %v46_v16 }
  0x22   :  { %927 = vmatmul.mubr.f32.vlgmr.msra.gmra.mxu0 %v45_v17  ;;  %929 = vmatprep.subr.mxu0 %v999_v18 }
  0x23   :  { %931 = vmatprep.mubr.msk.f32.mxu0 %vm1000_vm0, %v999_v18 }
  0xe2   :  { %v928_v21 = vpop.f32.mrf.mxu0 }
  0xe3   :  { %935 = vmatpush3.msra.mxu1 %v928_v21 }
  0xe4   :  { %v128_v24 = vpop.f32.mrf.mxu0  ;;  %937 = vmatmul.mubr.msk.f32.vlgmr.msra.gmra.mxu1 %vm137_vm1, %v1124_v19  ;;  %939 = vmatprep.subr.mxu1 %v304_v20 }
  0xe5   :  { %930 = vmatpush3.msra.mxu0 %v128_v24  ;;  %940 = vmatpush3.msra.mxu1 %v304_v20 }
  0xe6   :  { %932 = vmatmul.mubr.msk.f32.vlgmr.msra.gmra.mxu0 %vm137_vm1, %v1132_v22  ;;  %941 = vmatprep.subr.mxu1 %v303_v23 }
  0xe7   :  { %942 = vmatpush3.msra.mxu1 %v303_v23  ;;  %987 = vmatprep.subr.mxu0 %v999_v18 }
  0xe8   :  { %943 = vmatprep.subr.mxu1 %v302_v25  ;;  %989 = vmatprep.mubr.msk.f32.mxu0 %vm1000_vm0, %v999_v18 }
  0xe9   :  { %944 = vmatpush3.msra.mxu1 %v302_v25 }
  0xea   :  { %945 = vmatprep.subr.mxu1 %v301_v26 }
  0xeb   :  { %946 = vmatpush3.msra.mxu1 %v301_v26 }
  0xec   :  { %947 = vmatprep.subr.mxu1 %v300_v27 }
  0xed   :  { %948 = vmatpush3.msra.mxu1 %v300_v27 }
  0xee   :  { %949 = vmatprep.subr.mxu1 %v299_v28 }
  0xef   :  { %950 = vmatpush3.msra.mxu1 %v299_v28 }
  0xf0   :  { %951 = vmatprep.subr.mxu1 %v298_v29 }
  0xf1   :  { %952 = vmatpush3.msra.mxu1 %v298_v29  ;;  %v842_v29 = vld [vmem:[%s1253_s9] ss:$0 sm:$0xff] }
  0xf2   :  { %953 = vmatprep.subr.mxu1 %v297_v30 }
  0xf3   :  { %954 = vmatpush3.msra.mxu1 %v297_v30 }
  0xf4   :  { %958 = vmatprep.subr.mxu1 %v999_v18 }
 0x1a4   :  { %v280_v32 = vpop.f32.mrf.mxu1 }
 0x1a5   :  { %v292_v33 = vadd.f32 %v831_v31, %v280_v32 }
 0x1a6   :  { %v207_v34 = vpop.f32.mrf.mxu0  ;;  %v938_v35 = vpop.f32.mrf.mxu1 }
 0x1a7   :  { %v294_v37 = vmax.f32 %v292_v33, 0.0  ;;  %v291_v38 = vadd.f32 %v831_v31, %v207_v34  ;;  %v843_v35 = vld [vmem:[#allocation2] ss:$0 sm:$0xff] }
 0x1a8   :  { %v933_v40 = vpop.f32.mrf.mxu0 }
 0x1a9   :  { %v293_v41 = vmax.f32 %v291_v38, 0.0  ;;  %v296_v42 = vmul.f32 %v294_v37, %v1169_v36 }
 0x1ab   :  { %v295_v43 = vmul.f32 %v293_v41, %v1174_v39 }
 0x1ad   :  { %955 = vmatprep.mubr.msk.f32.mxu1 %vm305_vm2, %v295_v43 }
 0x1ae   :  { %956 = vmatmul.mubr.msk.f32.vlgmr.msra.gmra.mxu1 %vm305_vm2, %v296_v42 }
 0x1af   :  { %960 = vmatprep.mubr.msk.f32.mxu1 %vm1000_vm0, %v999_v18 }
 0x26e   :  { %v957_v44 = vpop.f32.mrf.mxu1 }
 0x270   :  { %v378_v45 = vpop.f32.mrf.mxu1 }
 0x271   :  { %959 = vmatpush3.msra.mxu1 %v378_v45 }
 0x272   :  { %961 = vmatmul.mubr.msk.f32.vlgmr.msra.gmra.mxu1 %vm137_vm1, %v1132_v22  ;;  %963 = vmatprep.subr.mxu1 %v999_v18 }
 0x273   :  { %964 = vmatpush3.msra.mxu1 %v957_v44  ;;  %965 = vmatprep.mubr.msk.f32.mxu1 %vm1000_vm0, %v999_v18 }
 0x274   :  { %968 = vmatprep.subr.mxu1 %v547_v46 }
 0x276   :  { %966 = vmatmul.mubr.msk.f32.vlgmr.msra.gmra.mxu1 %vm137_vm1, %v1124_v19 }
 0x277   :  { %969 = vmatpush3.msra.mxu1 %v547_v46 }
 0x278   :  { %970 = vmatprep.subr.mxu1 %v546_v47 }
 0x279   :  { %971 = vmatpush3.msra.mxu1 %v546_v47 }
 0x27a   :  { %972 = vmatprep.subr.mxu1 %v545_v48 }
 0x27b   :  { %973 = vmatpush3.msra.mxu1 %v545_v48 }
 0x27c   :  { %974 = vmatprep.subr.mxu1 %v544_v49 }
 0x27d   :  { %975 = vmatpush3.msra.mxu1 %v544_v49 }
 0x27e   :  { %976 = vmatprep.subr.mxu1 %v543_v50 }
 0x27f   :  { %977 = vmatpush3.msra.mxu1 %v543_v50 }
 0x280   :  { %978 = vmatprep.subr.mxu1 %v542_v51 }
 0x281   :  { %979 = vmatpush3.msra.mxu1 %v542_v51 }
 0x282   :  { %980 = vmatprep.subr.mxu1 %v541_v52 }
 0x283   :  { %981 = vmatpush3.msra.mxu1 %v541_v52 }
 0x284   :  { %982 = vmatprep.subr.mxu1 %v540_v53 }
 0x285   :  { %983 = vmatpush3.msra.mxu1 %v540_v53 }
 0x332   :  { %v453_v55 = vpop.f32.mrf.mxu1 }
 0x333   :  { %v534_v56 = vadd.f32 %v836_v54, %v453_v55 }
 0x334   :  { %v962_v57 = vpop.f32.mrf.mxu1 }
 0x335   :  { %v536_v58 = vmax.f32 %v534_v56, 0.0 }
 0x336   :  { %v523_v59 = vpop.f32.mrf.mxu1 }
 0x337   :  { %v538_v60 = vmul.f32 %v536_v58, %v1174_v39  ;;  %v535_v61 = vadd.f32 %v836_v54, %v523_v59 }
 0x338   :  { %v967_v62 = vpop.f32.mrf.mxu1 }
 0x339   :  { %v537_v63 = vmax.f32 %v535_v61, 0.0  ;;  %984 = vmatprep.mubr.msk.f32.mxu1 %vm305_vm2, %v538_v60 }
 0x33b   :  { %v539_v0 = vmul.f32 %v537_v63, %v1169_v36 }
 0x33d   :  { %985 = vmatmul.mubr.msk.f32.vlgmr.msra.gmra.mxu1 %vm305_vm2, %v539_v0 }
 0x3fd   :  { %v986_v1 = vpop.f32.mrf.mxu1 }
 0x3ff   :  { %v620_v2 = vpop.f32.mrf.mxu1 }
 0x400   :  { %988 = vmatpush3.msra.mxu0 %v620_v2 }
 0x401   :  { %990 = vmatmul.mubr.msk.f32.vlgmr.msra.gmra.mxu0 %vm137_vm1, %v1132_v22  ;;  %992 = vmatprep.subr.mxu0 %v999_v18 }
 0x402   :  { %993 = vmatpush3.msra.mxu0 %v986_v1  ;;  %994 = vmatprep.mubr.msk.f32.mxu0 %vm1000_vm0, %v999_v18 }
 0x405   :  { %995 = vmatmul.mubr.msk.f32.vlgmr.msra.gmra.mxu0 %vm137_vm1, %v1124_v19 }
 0x4c1   :  { %v695_v5 = vpop.f32.mrf.mxu0 }
 0x4c2   :  { %v776_v6 = vadd.f32 %v841_v4, %v695_v5 }
 0x4c3   :  { %v991_v7 = vpop.f32.mrf.mxu0 }
 0x4c4   :  { %v778_v8 = vmax.f32 %v776_v6, 0.0 }
 0x4c5   :  { %v765_v9 = vpop.f32.mrf.mxu0 }
 0x4c6   :  { %v780_v10 = vmul.f32 %v778_v8, %v1174_v39  ;;  %v777_v11 = vadd.f32 %v841_v4, %v765_v9 }
 0x4c7   :  { %v996_v12 = vpop.f32.mrf.mxu0 }
 0x4c8   :  { %v782_v13 = vsel %vm305_vm2, %v780_v10, 0.0  ;;  %v779_v14 = vmax.f32 %v777_v11, 0.0 }
 0x4c9   :  { %v783_v15 = vrot.slane %v782_v13, 4 }
 0x4ca   :  { %v781_v16 = vmul.f32 %v779_v14, %v1169_v36 }
 0x4cb   :  { %v784_v17 = vadd.f32 %v783_v15, %v782_v13 }
 0x4cc   :  { %v789_v18 = vsel %vm305_vm2, %v781_v16, 0.0 }
 0x4cd   :  { %v785_v19 = vrot.slane %v784_v17, 2  ;;  %v790_v20 = vrot.slane %v789_v18, 4 }
 0x4cf   :  { %v786_v21 = vadd.f32 %v785_v19, %v784_v17  ;;  %v791_v22 = vadd.f32 %v790_v20, %v789_v18 }
 0x4d1   :  { %v792_v23 = vrot.slane %v791_v22, 2  ;;  %v787_v25 = vrot.slane %v786_v21, 1 }
 0x4d3   :  { %v793_v24 = vadd.f32 %v792_v23, %v791_v22  ;;  %v788_v27 = vadd.f32 %v787_v25, %v786_v21 }
 0x4d5   :  { %v794_v26 = vrot.slane %v793_v24, 1  ;;  %v803_v31 = vmul.f32 %v842_v29, %v788_v27 }
 0x4d7   :  { %v795_v28 = vadd.f32 %v794_v26, %v793_v24 }
 0x4d9   :  { %v804_v30 = vmul.f32 %v842_v29, %v795_v28 }
 0x4db   :  { %v807_v32 = vrot.slane %v804_v30, 7 }
 0x4dd   :  { %v809_v33 = vsel %vm808_vm3, %v807_v32, %v803_v31 }
 0x4de   :  { %v812_v34 = vsel %vm811_vm4, %v809_v33, 0.0 }
 0x4df   :  { %813 = vadd.xlane.f32.xlu0 %v812_v34 }
 0x568   :  { %v814_v36 = vpop.xlane.xlu0 %813 }
 0x569   :  { %v822_v37 = vadd.f32 %v843_v35, %v814_v36 }
 0x56b   :  { %824 = vst.msk [vmem:[%s1254_s11] sm:$0x3] %vm823_vm5, %v822_v37 }

</bundles_post_ra>
